<compile_context>
chip_gen: v6e
topology: v6e:2x2x1
jax: 0.10.0
libtpu: 0.0.40
codegen_flags: <defaults>
</compile_context>

<pallas_src>
import jax
import jax.numpy as jnp
from jax.experimental import pallas as pl
from jax.experimental.pallas import tpu as pltpu

HIDDEN = 100
HIDDEN_PAD = 128  # lane-aligned hidden width fed to the kernel


def _mlp_kernel(x_ref, w1_ref, b1_ref, w2_ref, b2_ref, w3t_ref, b3_ref, out_ref):
    tile_b, d_in = x_ref.shape
    d_out = out_ref.shape[-1]

    x = x_ref[...]                                            # [tile_b, d_in] f32

    # ---- Layer 1: tiny-K -> VPU broadcast-FMAs in f32 (no MXU pass) ------------
    # TODO(synk): for large d_in/d_out fall back to MXU dots; this unrolled VPU
    # path assumes small RL-style input/output dims.
    acc = b1_ref[...] + x[:, 0:1] * w1_ref[0:1, :]            # [tile_b, 128] f32
    for k in range(1, d_in):                                  # static unroll (d_in tiny)
        acc = acc + x[:, k:k + 1] * w1_ref[k:k + 1, :]
    h1 = jnp.maximum(acc, 0.0).astype(jnp.bfloat16)           # fused ReLU + cast

    # ---- Layer 2: 128x128 on the MXU (bf16 in, f32 accumulate), fused epilogue --
    h2 = jnp.maximum(
        jnp.dot(h1, w2_ref[...], preferred_element_type=jnp.float32) + b2_ref[...],
        0.0)                                                  # [tile_b, 128] f32

    # ---- Layer 3: tiny-N -> VPU multiply + XLU lane reduction per column --------
    lane = jax.lax.broadcasted_iota(jnp.int32, (1, d_out), 1)  # [1, d_out]
    out = jnp.zeros((tile_b, d_out), jnp.float32) + b3_ref[...]
    for j in range(d_out):                                    # static unroll (d_out tiny)
        col = jnp.sum(h2 * w3t_ref[j:j + 1, :], axis=-1, keepdims=True)  # [tile_b, 1]
        out = out + jnp.where(lane == j, col, 0.0)
    out_ref[...] = out                                        # single full-block store


def _choose_tile(batch, tile_b):
    """Sublane-aligned batch tile: avoid padding in the common case, keep >=2
    grid steps when the batch allows it (v7x megacore), cap at tile_b rows."""
    b_pad = max(8, ((batch + 7) // 8) * 8)
    rows8 = b_pad // 8
    cap = max(1, min(tile_b // 8, rows8))
    if rows8 >= 2:
        cap = min(cap, max(1, rows8 // 2))        # leave at least 2 grid steps
    m = None
    for cand in range(cap, max(0, cap // 2), -1):  # prefer an exact divisor -> no padding
        if rows8 % cand == 0:
            m = cand
            break
    if m is None:
        m = cap                                    # accept small padding over tiny tiles
    tile = 8 * m
    b_total = ((b_pad + tile - 1) // tile) * tile
    return tile, b_total


def mlp_forward(x, params, *, tile_b=4096):
    """Fused MLP forward. x: [B, D_in] f32; params from pack_params(). -> [B, D_out] f32."""
    w1, b1, w2, b2, w3t, b3 = params
    B, d_in = x.shape
    d_out = w3t.shape[0]
    hidden = w1.shape[1]

    tile, b_total = _choose_tile(B, tile_b)
    if b_total != B:                               # only pad when actually needed
        x = jnp.pad(x, ((0, b_total - B), (0, 0)))
    grid = (b_total // tile,)

    def const_spec(a):
        nd = a.ndim
        return pl.BlockSpec(a.shape, lambda i, nd=nd: (0,) * nd)  # VMEM-resident weights

    flops = 2 * b_total * (d_in + hidden + d_out) * hidden
    bytes_accessed = (b_total * d_in * 4 + b_total * d_out * 4
                      + sum(int(p.size) * p.dtype.itemsize for p in params))

    out = pl.pallas_call(
        _mlp_kernel,
        out_shape=jax.ShapeDtypeStruct((b_total, d_out), jnp.float32),
        grid=grid,
        in_specs=[
            pl.BlockSpec((tile, d_in), lambda i: (i, 0)),   # streamed per batch tile
            const_spec(w1), const_spec(b1),
            const_spec(w2), const_spec(b2),
            const_spec(w3t), const_spec(b3),
        ],
        out_specs=pl.BlockSpec((tile, d_out), lambda i: (i, 0)),
        compiler_params=pltpu.CompilerParams(
            dimension_semantics=("parallel",),     # batch tiles shard across TCs (v7x)
            vmem_limit_bytes=32 << 20,             # weights ~80 KiB, temps a few MiB
        ),
        cost_estimate=pl.CostEstimate(
            flops=flops, transcendentals=0, bytes_accessed=bytes_accessed),
    )(x, w1, b1, w2, b2, w3t, b3)
    return out if b_total == B else out[:B]


def init_params(key, input_dim, output_dim, hidden=HIDDEN):
    """Torch-like nn.Linear init, weights stored [fan_in, fan_out] (transposed vs torch)."""
    ks = jax.random.split(key, 6)

    def linear(kw, kb, fan_in, fan_out):
        bound = 1.0 / jnp.sqrt(jnp.float32(fan_in))
        w = jax.random.uniform(kw, (fan_in, fan_out), jnp.float32, -bound, bound)
        b = jax.random.uniform(kb, (1, fan_out), jnp.float32, -bound, bound)
        return w, b

    w1, b1 = linear(ks[0], ks[1], input_dim, hidden)
    w2, b2 = linear(ks[2], ks[3], hidden, hidden)
    w3, b3 = linear(ks[4], ks[5], hidden, output_dim)
    return w1, b1, w2, b2, w3, b3


def pack_params(w1, b1, w2, b2, w3, b3, hidden_pad=HIDDEN_PAD):
    """Zero-pad hidden 100->128; w2 -> bf16 (MXU layer); w1/w3 stay f32 (VPU layers),
    w3 is stored transposed [d_out, 128] so each output column is a lane-dense row."""
    hidden = w1.shape[1]
    ph = hidden_pad - hidden
    w1p = jnp.pad(w1, ((0, 0), (0, ph))).astype(jnp.float32)     # [D_in, 128] f32
    b1p = jnp.pad(b1, ((0, 0), (0, ph)))                         # [1, 128] f32 (pad = 0)
    w2p = jnp.pad(w2, ((0, ph), (0, ph))).astype(jnp.bfloat16)   # [128, 128] bf16
    b2p = jnp.pad(b2, ((0, 0), (0, ph)))                         # [1, 128] f32
    w3t = jnp.pad(w3, ((0, ph), (0, 0))).T.astype(jnp.float32)   # [D_out, 128] f32 (pad = 0)
    b3p = b3                                                     # [1, D_out] f32
    return w1p, b1p, w2p, b2p, w3t, b3p


if __name__ == "__main__":
    key = jax.random.PRNGKey(0)
    k_x, k_p = jax.random.split(key)

    B, input_dim, output_dim = 16, 4, 2
    x = jax.random.normal(k_x, (B, input_dim), jnp.float32)

    raw = init_params(k_p, input_dim, output_dim)
    params = pack_params(*raw)

    # B=16 -> tile=8, grid=(2,): exercises the batch pipeline / megacore path.
    out = mlp_forward(x, params)
    jax.block_until_ready(out)
    assert out.shape == (B, output_dim)

    # Reference 1: same mixed-precision math (layer-2 matmul in bf16) in plain JAX.
    w1p, b1p, w2p, b2p, w3tp, b3p = params
    r1 = jnp.maximum(x @ w1p + b1p, 0.0)
    r2 = jnp.maximum(jnp.dot(r1.astype(jnp.bfloat16), w2p,
                             preferred_element_type=jnp.float32) + b2p, 0.0)
    ref_mixed = r2 @ w3tp.T + b3p
    assert jnp.allclose(out, ref_mixed, atol=1e-2, rtol=1e-2)

    # Reference 2: full-f32 math of the original PyTorch module (loose tolerance
    # accounting for the bf16 layer-2 matmul).
    w1, b1, w2, b2, w3, b3 = raw
    ref_f32 = jnp.maximum(x @ w1 + b1, 0.0)
    ref_f32 = jnp.maximum(ref_f32 @ w2 + b2, 0.0)
    ref_f32 = ref_f32 @ w3 + b3
    assert jnp.allclose(out, ref_f32, atol=5e-2, rtol=5e-2)

    # Exercise the padded-batch path (B not a multiple of the chosen tile).
    B2 = 20
    x2 = jax.random.normal(k_x, (B2, input_dim), jnp.float32)
    out2 = mlp_forward(x2, params)
    jax.block_until_ready(out2)
    r = jnp.maximum(x2 @ w1 + b1, 0.0)
    r = jnp.maximum(r @ w2 + b2, 0.0)
    r = r @ w3 + b3
    assert out2.shape == (B2, output_dim)
    assert jnp.allclose(out2, r, atol=5e-2, rtol=5e-2)

    print("KERNEL_OK")
</pallas_src>

<mosaic_0001>
module attributes {stable_mosaic.version = 11 : i64} {
  func.func @_mlp_kernel(%arg0: i32, %arg1: memref<8x4xf32, #tpu.memory_space<vmem>>, %arg2: memref<4x128xf32, #tpu.memory_space<vmem>>, %arg3: memref<1x128xf32, #tpu.memory_space<vmem>>, %arg4: memref<128x128xbf16, #tpu.memory_space<vmem>>, %arg5: memref<1x128xf32, #tpu.memory_space<vmem>>, %arg6: memref<2x128xf32, #tpu.memory_space<vmem>>, %arg7: memref<1x2xf32, #tpu.memory_space<vmem>>, %arg8: memref<8x2xf32, #tpu.memory_space<vmem>>) attributes {dimension_semantics = [#tpu.dimension_semantics<parallel>], iteration_bounds = array<i64: 2>, scalar_prefetch = 0 : i64, scratch_operands = 0 : i64, tpu.core_type = #tpu.core_type<tc>, window_params = [{transform_indices = @transform_0, window_bounds = array<i64: 8, 4>}, {pipeline_mode = #tpu.pipeline_mode<synchronous>, transform_indices = @transform_1, window_bounds = array<i64: 4, 128>}, {pipeline_mode = #tpu.pipeline_mode<synchronous>, transform_indices = @transform_2, window_bounds = array<i64: 1, 128>}, {pipeline_mode = #tpu.pipeline_mode<synchronous>, transform_indices = @transform_3, window_bounds = array<i64: 128, 128>}, {pipeline_mode = #tpu.pipeline_mode<synchronous>, transform_indices = @transform_4, window_bounds = array<i64: 1, 128>}, {pipeline_mode = #tpu.pipeline_mode<synchronous>, transform_indices = @transform_5, window_bounds = array<i64: 2, 128>}, {pipeline_mode = #tpu.pipeline_mode<synchronous>, transform_indices = @transform_6, window_bounds = array<i64: 1, 2>}, {transform_indices = @transform_7, window_bounds = array<i64: 8, 2>}]} {
    %c0 = arith.constant 0 : index
    %c0_0 = arith.constant 0 : index
    %0 = vector.load %arg1[%c0, %c0_0] : memref<8x4xf32, #tpu.memory_space<vmem>>, vector<8x4xf32>
    %c0_1 = arith.constant 0 : index
    %c0_2 = arith.constant 0 : index
    %1 = vector.load %arg3[%c0_1, %c0_2] : memref<1x128xf32, #tpu.memory_space<vmem>>, vector<1x128xf32>
    %2 = vector.extract_strided_slice %0 {offsets = [0, 0], sizes = [8, 1], strides = [1, 1]} : vector<8x4xf32> to vector<8x1xf32>
    %c0_3 = arith.constant 0 : index
    %c0_4 = arith.constant 0 : index
    %3 = vector.load %arg2[%c0_3, %c0_4] : memref<4x128xf32, #tpu.memory_space<vmem>>, vector<1x128xf32>
    %4 = vector.broadcast %2 : vector<8x1xf32> to vector<8x128xf32>
    %5 = vector.broadcast %3 : vector<1x128xf32> to vector<8x128xf32>
    %6 = arith.mulf %4, %5 : vector<8x128xf32>
    %7 = vector.broadcast %1 : vector<1x128xf32> to vector<8x128xf32>
    %8 = arith.addf %7, %6 : vector<8x128xf32>
    %9 = vector.extract_strided_slice %0 {offsets = [0, 1], sizes = [8, 1], strides = [1, 1]} : vector<8x4xf32> to vector<8x1xf32>
    %c1 = arith.constant 1 : index
    %c0_5 = arith.constant 0 : index
    %10 = vector.load %arg2[%c1, %c0_5] : memref<4x128xf32, #tpu.memory_space<vmem>>, vector<1x128xf32>
    %11 = vector.broadcast %9 : vector<8x1xf32> to vector<8x128xf32>
    %12 = vector.broadcast %10 : vector<1x128xf32> to vector<8x128xf32>
    %13 = arith.mulf %11, %12 : vector<8x128xf32>
    %14 = arith.addf %8, %13 : vector<8x128xf32>
    %15 = vector.extract_strided_slice %0 {offsets = [0, 2], sizes = [8, 1], strides = [1, 1]} : vector<8x4xf32> to vector<8x1xf32>
    %c2 = arith.constant 2 : index
    %c0_6 = arith.constant 0 : index
    %16 = vector.load %arg2[%c2, %c0_6] : memref<4x128xf32, #tpu.memory_space<vmem>>, vector<1x128xf32>
    %17 = vector.broadcast %15 : vector<8x1xf32> to vector<8x128xf32>
    %18 = vector.broadcast %16 : vector<1x128xf32> to vector<8x128xf32>
    %19 = arith.mulf %17, %18 : vector<8x128xf32>
    %20 = arith.addf %14, %19 : vector<8x128xf32>
    %21 = vector.extract_strided_slice %0 {offsets = [0, 3], sizes = [8, 1], strides = [1, 1]} : vector<8x4xf32> to vector<8x1xf32>
    %c3 = arith.constant 3 : index
    %c0_7 = arith.constant 0 : index
    %22 = vector.load %arg2[%c3, %c0_7] : memref<4x128xf32, #tpu.memory_space<vmem>>, vector<1x128xf32>
    %23 = vector.broadcast %21 : vector<8x1xf32> to vector<8x128xf32>
    %24 = vector.broadcast %22 : vector<1x128xf32> to vector<8x128xf32>
    %25 = arith.mulf %23, %24 : vector<8x128xf32>
    %26 = arith.addf %20, %25 : vector<8x128xf32>
    %cst = arith.constant 0.000000e+00 : f32
    %27 = vector.broadcast %cst : f32 to vector<8x128xf32>
    %28 = arith.maximumf %26, %27 : vector<8x128xf32>
    %29 = arith.truncf %28 : vector<8x128xf32> to vector<8x128xbf16>
    %c0_8 = arith.constant 0 : index
    %c0_9 = arith.constant 0 : index
    %30 = vector.load %arg4[%c0_8, %c0_9] : memref<128x128xbf16, #tpu.memory_space<vmem>>, vector<128x128xbf16>
    %cst_10 = arith.constant dense<0.000000e+00> : vector<8x128xf32>
    %31 = tpu.matmul %29, %30, %cst_10 {dimension_numbers = #tpu.dot_dimension_numbers<[1], [0], [0], [1], [0, 0, 1, 1], [], []>} : vector<8x128xbf16>, vector<128x128xbf16>, vector<8x128xf32> -> vector<8x128xf32>
    %c0_11 = arith.constant 0 : index
    %c0_12 = arith.constant 0 : index
    %32 = vector.load %arg5[%c0_11, %c0_12] : memref<1x128xf32, #tpu.memory_space<vmem>>, vector<1x128xf32>
    %33 = vector.broadcast %32 : vector<1x128xf32> to vector<8x128xf32>
    %34 = arith.addf %31, %33 : vector<8x128xf32>
    %cst_13 = arith.constant 0.000000e+00 : f32
    %35 = vector.broadcast %cst_13 : f32 to vector<8x128xf32>
    %36 = arith.maximumf %34, %35 : vector<8x128xf32>
    %37 = tpu.iota {dimensions = array<i32: 1>} : vector<1x2xi32>
    %cst_14 = arith.constant 0.000000e+00 : f32
    %38 = vector.broadcast %cst_14 : f32 to vector<8x2xf32>
    %c0_15 = arith.constant 0 : index
    %c0_16 = arith.constant 0 : index
    %39 = vector.load %arg7[%c0_15, %c0_16] : memref<1x2xf32, #tpu.memory_space<vmem>>, vector<1x2xf32>
    %40 = vector.broadcast %39 : vector<1x2xf32> to vector<8x2xf32>
    %41 = arith.addf %38, %40 : vector<8x2xf32>
    %c0_17 = arith.constant 0 : index
    %c0_18 = arith.constant 0 : index
    %42 = vector.load %arg6[%c0_17, %c0_18] : memref<2x128xf32, #tpu.memory_space<vmem>>, vector<1x128xf32>
    %43 = vector.broadcast %42 : vector<1x128xf32> to vector<8x128xf32>
    %44 = arith.mulf %36, %43 : vector<8x128xf32>
    %cst_19 = arith.constant dense<0.000000e+00> : vector<8xf32>
    %45 = vector.multi_reduction <add>, %44, %cst_19 [1] : vector<8x128xf32> to vector<8xf32>
    %46 = vector.shape_cast %45 : vector<8xf32> to vector<8x1xf32>
    %c0_i32 = arith.constant 0 : i32
    %47 = vector.broadcast %c0_i32 : i32 to vector<1x2xi32>
    %48 = arith.cmpi eq, %37, %47 : vector<1x2xi32>
    %cst_20 = arith.constant 0.000000e+00 : f32
    %49 = vector.shape_cast %48 : vector<1x2xi1> to vector<1x2xi1>
    %50 = vector.broadcast %49 : vector<1x2xi1> to vector<8x2xi1>
    %51 = vector.shape_cast %46 : vector<8x1xf32> to vector<8x1xf32>
    %52 = vector.broadcast %51 : vector<8x1xf32> to vector<8x2xf32>
    %53 = vector.broadcast %cst_20 : f32 to vector<8x2xf32>
    %54 = arith.select %50, %52, %53 : vector<8x2xi1>, vector<8x2xf32>
    %55 = arith.addf %41, %54 : vector<8x2xf32>
    %c1_21 = arith.constant 1 : index
    %c0_22 = arith.constant 0 : index
    %56 = vector.load %arg6[%c1_21, %c0_22] : memref<2x128xf32, #tpu.memory_space<vmem>>, vector<1x128xf32>
    %57 = vector.broadcast %56 : vector<1x128xf32> to vector<8x128xf32>
    %58 = arith.mulf %36, %57 : vector<8x128xf32>
    %cst_23 = arith.constant dense<0.000000e+00> : vector<8xf32>
    %59 = vector.multi_reduction <add>, %58, %cst_23 [1] : vector<8x128xf32> to vector<8xf32>
    %60 = vector.shape_cast %59 : vector<8xf32> to vector<8x1xf32>
    %c1_i32 = arith.constant 1 : i32
    %61 = vector.broadcast %c1_i32 : i32 to vector<1x2xi32>
    %62 = arith.cmpi eq, %37, %61 : vector<1x2xi32>
    %cst_24 = arith.constant 0.000000e+00 : f32
    %63 = vector.shape_cast %62 : vector<1x2xi1> to vector<1x2xi1>
    %64 = vector.broadcast %63 : vector<1x2xi1> to vector<8x2xi1>
    %65 = vector.shape_cast %60 : vector<8x1xf32> to vector<8x1xf32>
    %66 = vector.broadcast %65 : vector<8x1xf32> to vector<8x2xf32>
    %67 = vector.broadcast %cst_24 : f32 to vector<8x2xf32>
    %68 = arith.select %64, %66, %67 : vector<8x2xi1>, vector<8x2xf32>
    %69 = arith.addf %55, %68 : vector<8x2xf32>
    %c0_25 = arith.constant 0 : index
    %c0_26 = arith.constant 0 : index
    %70 = vector.load %arg8[%c0_25, %c0_26] : memref<8x2xf32, #tpu.memory_space<vmem>>, vector<8x2xf32>
    tpu.vector_store %arg8[%c0_25, %c0_26], %69 {strides = array<i32>} : memref<8x2xf32, #tpu.memory_space<vmem>>, vector<8x2xf32>,
    return
  }
  func.func @transform_0(%arg0: i32) -> (i32, i32) {
    %c0_i32 = arith.constant 0 : i32
    %c0_i32_0 = arith.constant 0 : i32
    return %arg0, %c0_i32 : i32, i32
  }
  func.func @transform_1(%arg0: i32) -> (i32, i32) {
    %c0_i32 = arith.constant 0 : i32
    %c0_i32_0 = arith.constant 0 : i32
    %c0_i32_1 = arith.constant 0 : i32
    return %c0_i32, %c0_i32_0 : i32, i32
  }
  func.func @transform_2(%arg0: i32) -> (i32, i32) {
    %c0_i32 = arith.constant 0 : i32
    %c0_i32_0 = arith.constant 0 : i32
    %c0_i32_1 = arith.constant 0 : i32
    return %c0_i32, %c0_i32_0 : i32, i32
  }
  func.func @transform_3(%arg0: i32) -> (i32, i32) {
    %c0_i32 = arith.constant 0 : i32
    %c0_i32_0 = arith.constant 0 : i32
    %c0_i32_1 = arith.constant 0 : i32
    return %c0_i32, %c0_i32_0 : i32, i32
  }
  func.func @transform_4(%arg0: i32) -> (i32, i32) {
    %c0_i32 = arith.constant 0 : i32
    %c0_i32_0 = arith.constant 0 : i32
    %c0_i32_1 = arith.constant 0 : i32
    return %c0_i32, %c0_i32_0 : i32, i32
  }
  func.func @transform_5(%arg0: i32) -> (i32, i32) {
    %c0_i32 = arith.constant 0 : i32
    %c0_i32_0 = arith.constant 0 : i32
    %c0_i32_1 = arith.constant 0 : i32
    return %c0_i32, %c0_i32_0 : i32, i32
  }
  func.func @transform_6(%arg0: i32) -> (i32, i32) {
    %c0_i32 = arith.constant 0 : i32
    %c0_i32_0 = arith.constant 0 : i32
    %c0_i32_1 = arith.constant 0 : i32
    return %c0_i32, %c0_i32_0 : i32, i32
  }
  func.func @transform_7(%arg0: i32) -> (i32, i32) {
    %c0_i32 = arith.constant 0 : i32
    %c0_i32_0 = arith.constant 0 : i32
    return %arg0, %c0_i32 : i32, i32
  }
}

</mosaic_0001>

<bundles_post_ra>
// kernel: tpu_custom_call.1
= control target key start
LH: loop header
LB: loop body
LE: loop exit
PB: predicated region body
PF: predicated region fallthrough
CT: control target
= control target key end

     0   :  { %12 = vsyncpa [#allocation3], 0  ;;  %s744_s24 = smov 0   ;;  %s817_s0 = inlined_call_operand.vmem [shape: f32[16,4], index: 0, kind: input, shape index: {}]   ;;  %s818_s1 = inlined_call_operand.vmem [shape: f32[4,128], index: 1, kind: input, shape index: {}]   ;;  %s819_s2 = inlined_call_operand.vmem [shape: f32[1,128], index: 2, kind: input, shape index: {}]   ;;  %s820_s3 = inlined_call_operand.hbm [shape: bf16[128,128], index: 3, kind: input, shape index: {}]   ;;  %s821_s4 = inlined_call_operand.vmem [shape: f32[1,128], index: 4, kind: input, shape index: {}]   ;;  %s822_s5 = inlined_call_operand.vmem [shape: f32[2,128], index: 5, kind: input, shape index: {}]   ;;  %s823_s6 = inlined_call_operand.vmem [shape: f32[1,2], index: 6, kind: input, shape index: {}]   ;;  %s824_s7 = inlined_call_operand.vmem [shape: f32[16,2], index: 7, kind: output, shape index: {}]  }
   0x1 LB: > { %s750_s25 = sadd.s32 4294967295, %s693_s24   ;;  %p562_p0 = scmp.ge.s32.totalorder %s693_s24, 1  ;;  %s693_s24 = sphi %s744_s24, %s18_s24  }
   0x2   : > { %p201_p1 = scmp.lt.s32.totalorder %s693_s24, 3  ;;  %s695_s26 = smov [#allocation2]  }
   0x3   : > { %s219_s27 = sshll.u32 %s695_s26, 4  ;;  %p625_p3 = scmp.eq.s32.totalorder %s750_s25, 0  ;;  %s220_s27 = int_to_ptr.vmem [resolvable:$true] %s219_s27 }
   0x4   : > { %p754_p2 = pnand %p562_p0, %p201_p1  ;;  %s668_s29 = scalar_lea.vmem %s220_s27, 1024 }
   0x5   : > { %p669_p7 = scmp.ne.s32.totalorder %s220_s27, %s668_s29  ;;  %p676_p10 = scmp.lt.s32.totalorder %s220_s27, %s220_s27 }
   0x6   : > { %p621_p4 = pneg %p754_p2  ;;  %p677_p11 = scmp.lt.s32.totalorder %s668_s29, %s668_s29 }
   0x8   : > { %p622_p5 = pnand %p625_p3, %p621_p4  ;;  %p678_p12 = por %p677_p11, %p676_p10 }
   0xa   : > { %p659_p6 = pneg %p622_p5 }
   0xc   : > { %p671_p8 = pnand %p669_p7, %p659_p6 }
   0xe   : > { %p672_p9 = pneg %p671_p8 }
  0x10   : > { %p679_p13 = pnand %p678_p12, %p672_p9 }
  0x12   : > { %682 = shalt.err (!%p679_p13)
}
  0x13   : > { %s696_s30 = smov 64   ;;  %s697_s8 = smov 4  }
  0x14   : > { %624 = dma.hbm_to_vmem [thread:$0]  (!%p622_p5), %s820_s3, 1024, %s220_s27, [#allocation3], %s696_s30, %s696_s30, %s697_s8  }
  0x15   : > { %251 = sbr.rel (%p754_p2) target bundleno = 517 (0x205), region = 48 }
  0x1a   : > { %688 = dma.done.wait (%p625_p3), [#allocation3], 1024  }
  0x1b   : > { %690 = vsyncadd (%p625_p3), [#allocation3], 4294966272  ;;  %p281_p0 = scmp.lt.s32.totalorder %s750_s25, 1  ;;  %v698_v0 = vmov 0   ;;  %v699_v1 = vmov 2   ;;  %v700_v2 = vmov 0.0   ;;  %v457_v44 = vlaneseq }
  0x1c   : > { %644 = vset.pattern.permute.xlu0 %v698_v0  ;;  %646 = vset.pattern.permute.xlu1 %v699_v1  ;;  %v649_v4 = vld [vmem:[#allocation2 + $0x38] sm:$0xff]   ;;  %v650_v5 = vld [vmem:[#allocation2 + $0x30] sm:$0xff]   ;;  %v701_v6 = vmov 1   ;;  %v702_v7 = vmov 3   ;;  %v651_v8 = vld [vmem:[#allocation2 + $0x28] sm:$0xff]   ;;  %vm703_vm0 = vmmov 0  }
  0x1d   : > { %s827_s25 = smov (!%p281_p0, %s750_s25), 1  ;;  %597 = vmatprep.subr.bf16.mxu0 %v700_v2  ;;  %v652_v9 = vld [vmem:[#allocation2 + $0x20] sm:$0xff]   ;;  %613 = vmatprep.mubr.msk.bf16.mxu0 %vm703_vm0, %v700_v2  ;;  %v653_v10 = vld [vmem:[#allocation2 + $0x18] sm:$0xff]   ;;  %v654_v11 = vld [vmem:[#allocation2 + $0x10] sm:$0xff]   ;;  %v458_v45 = vand.u32 127, %v457_v44  ;;  %vm493_vm3 = vcmask 15360  }
  0x1e   : > { %s567_s11 = sshll.u32 %s827_s25, 3  ;;  %598 = vmatpush3.bf16.msra.mxu0 %v649_v4  ;;  %v655_v12 = vld [vmem:[#allocation2 + $0x8] sm:$0xff]   ;;  %v656_v13 = vld [vmem:[#allocation2] sm:$0xff]  }
  0x1f   : > { %s284_s14 = scalar_lea.vmem %s817_s0, %s567_s11  ;;  %599 = vmatprep.subr.bf16.mxu0 %v700_v2  ;;  %v569_v14 = vld [vmem:[%s818_s1] ss:$0 sm:$0xff]  ;;  %v571_v19 = vld [vmem:[%s818_s1 + $0x1] ss:$0 sm:$0xff]  ;;  %v572_v20 = vld [vmem:[%s818_s1 + $0x2] ss:$0 sm:$0xff]  ;;  %s288_s15 = scalar_lea.vmem %s824_s7, %s567_s11 }
  0x20   : > { %v290_v3 = vld [vmem:[%s284_s14] sm:$0xff]  ;;  %vm475_vm1 = vcmp.eq.s32.totalorder %v458_v45, 0  ;;  %vm488_vm2 = vcmp.eq.s32.totalorder %v458_v45, 1 }
  0x21   : > { %295 = vperm.xlu0 %644, %v290_v3   ;;  %323 = vperm.xlu1 %646, %v290_v3   ;;  %v570_v18 = vld [vmem:[%s819_s2] ss:$0 sm:$0xff]  ;;  %v573_v22 = vld [vmem:[%s818_s1 + $0x3] ss:$0 sm:$0xff]  ;;  %v585_v37 = vld [vmem:[%s822_s5 + $0x1] ss:$0 sm:$0xff] }
  0x22   : > { %600 = vmatpush3.bf16.msra.mxu0 %v650_v5  ;;  %v574_v33 = vld [vmem:[%s821_s4] ss:$0 sm:$0xff] }
  0x23   : > { %601 = vmatprep.subr.bf16.mxu0 %v700_v2  ;;  %v584_v38 = vld [vmem:[%s822_s5] ss:$0 sm:$0xff] }
  0x24   : > { %v583_v46 = vld [vmem:[%s823_s6] ss:$0 sm:$0xff] }
  0x25   : > { %645 = vset.pattern.permute.xlu0 %v701_v6  ;;  %647 = vset.pattern.permute.xlu1 %v702_v7 }
  0x26   : > { %312 = vperm.xlu0 %645, %v290_v3   ;;  %334 = vperm.xlu1 %647, %v290_v3  }
  0x27   : > { %602 = vmatpush3.bf16.msra.mxu0 %v651_v8 }
  0x28   : > { %603 = vmatprep.subr.bf16.mxu0 %v700_v2 }
  0x2a   : > { %648 = vset.pattern.permute.xlu0 %v702_v7 }
  0x2b   : > { %604 = vmatpush3.bf16.msra.mxu0 %v652_v9 }
  0x2c   : > { %605 = vmatprep.subr.bf16.mxu0 %v700_v2 }
  0x2f   : > { %606 = vmatpush3.bf16.msra.mxu0 %v653_v10 }
  0x30   : > { %607 = vmatprep.subr.bf16.mxu0 %v700_v2 }
  0x33   : > { %608 = vmatpush3.bf16.msra.mxu0 %v654_v11 }
  0x34   : > { %609 = vmatprep.subr.bf16.mxu0 %v700_v2 }
  0x37   : > { %610 = vmatpush3.bf16.msra.mxu0 %v655_v12 }
  0x38   : > { %611 = vmatprep.subr.bf16.mxu0 %v700_v2 }
  0x3b   : > { %612 = vmatpush3.bf16.msra.mxu0 %v656_v13 }
  0x9c   : > { %v296_v15 = vpop.permute.xlu0 %295  ;;  %v324_v16 = vpop.permute.xlu1 %323 }
  0x9d   : > { %v302_v17 = vmul.f32 %v569_v14, %v296_v15  ;;  %v330_v26 = vmul.f32 %v572_v20, %v324_v16 }
  0x9f   : > { %v309_v24 = vadd.f32 %v570_v18, %v302_v17 }
  0xa1   : > { %v313_v21 = vpop.permute.xlu0 %312  ;;  %v335_v23 = vpop.permute.xlu1 %334 }
  0xa2   : > { %v319_v25 = vmul.f32 %v571_v19, %v313_v21  ;;  %v341_v28 = vmul.f32 %v573_v22, %v335_v23 }
  0xa4   : > { %v320_v27 = vadd.f32 %v319_v25, %v309_v24 }
  0xa6   : > { %v331_v29 = vadd.f32 %v330_v26, %v320_v27 }
  0xa8   : > { %v342_v30 = vadd.f32 %v341_v28, %v331_v29 }
  0xaa   : > { %v343_v31 = vmax.f32 %v342_v30, 0.0 }
  0xac   : > { %v344_v32 = vpack.c.bf16 %v343_v31, %v343_v31 }
  0xae   : > { %614 = vmatmul.mubr.bf16.vlgmr.msra.gmra.mxu0 %v344_v32 }
 0x16e   : > { %v450_v34 = vpop.f32.mrf.mxu0 }
 0x16f   : > { %v451_v35 = vadd.f32 %v574_v33, %v450_v34 }
 0x170   : > { %v615_v36 = vpop.f32.mrf.mxu0 }
 0x171   : > { %v456_v39 = vmax.f32 %v451_v35, 0.0 }
 0x172   : > { %v453_v40 = vpop.f32.mrf.mxu0 }
 0x173   : > { %v485_v41 = vmul.f32 %v585_v37, %v456_v39  ;;  %v472_v42 = vmul.f32 %v584_v38, %v456_v39 }
 0x174   : > { %v616_v43 = vpop.f32.mrf.mxu0 }
 0x175   : > { %486 = vadd.xlane.f32.xlu0 %v485_v41  ;;  %473 = vadd.xlane.f32.xlu1 %v472_v42 }
 0x1fe   : > { %v487_v47 = vpop.xlane.xlu0 %486  ;;  %v474_v48 = vpop.xlane.xlu1 %473 }
 0x1ff   : > { %v478_v49 = vsel %vm475_vm1, %v474_v48, 0.0  ;;  %v491_v51 = vsel %vm488_vm2, %v487_v47, 0.0 }
 0x200   : > { %v479_v50 = vadd.f32 %v583_v46, %v478_v49 }
 0x202   : > { %v492_v52 = vadd.f32 %v491_v51, %v479_v50 }
 0x204   : > { %494 = vst.msk [vmem:[%s288_s15] sm:$0xff] %vm493_vm3, %v492_v52 }
 0x205 PF: > { %s18_s24 = sadd.s32 1, %s693_s24  }
 0x206   : > { %p15_p1 = scmp.ge.s32.totalorder %s18_s24, 4  }
 0x208   :  { %17 = sbr.rel (!%p15_p1) target bundleno = 1 (0x1), region = 83 }
 0x20d   :  { %514 = vsyncpa [#allocation3], 1 }
 0x20e   :  { %516 = vsyncpa [#allocation3 + $0x1], 1 }

</bundles_post_ra>
